<compile_context>
chip_gen: v7x
topology: tpu7x:2x2x1
jax: 0.10.0
libtpu: 0.0.40
codegen_flags: <defaults>
</compile_context>

<pallas_src>
import math
import functools

import jax
import jax.numpy as jnp
from jax.experimental import pallas as pl
from jax.experimental.pallas import tpu as pltpu


# --------------------------------------------------------------------------- #
# Kernel
# --------------------------------------------------------------------------- #
def _ffn_fused_kernel(x_ref, w1_ref, b1_ref, w2_ref, b2_ref, out_ref):
    # x_ref:   (Cin,  TP)   bf16 activations; TP lanes = B*P folded + padded
    # w1_ref:  (Hcat, Cin)  bf16; all heads' ConvModule weights, BN folded in
    # b1_ref:  (Hcat, 1)    f32 folded BN bias
    # w2_ref:  (Cpad, Hcat) bf16 block-diagonal final-conv weights (all heads)
    # b2_ref:  (Cpad, 1)    f32 final-conv biases (zero in padding rows)
    # out_ref: (Cpad, TP)
    h = jnp.dot(w1_ref[...], x_ref[...], preferred_element_type=jnp.float32)
    h = jnp.maximum(h + b1_ref[...], 0.0)                      # f32 bias + ReLU
    # Second matmul in f32 (MXU has huge slack here; keeps precision tight).
    y = jnp.dot(w2_ref[...].astype(jnp.float32), h,
                preferred_element_type=jnp.float32) + b2_ref[...]
    out_ref[...] = y.astype(out_ref.dtype)


# --------------------------------------------------------------------------- #
# One-time weight fusion (run at model init, NOT per forward call)
# --------------------------------------------------------------------------- #
def _round_up(n, m):
    return (n + m - 1) // m * m


def fuse_ffn_params(params, heads, head_conv, bn_eps=1e-5,
                    compute_dtype=jnp.bfloat16):
    """Fold BN into the first-layer Conv1d weights, concatenate all heads'
    first layers, and build one block-diagonal second-layer matrix.
    Returns a dict of device arrays (streamed to the kernel every forward)."""
    head_names = list(heads.keys())
    w1_list, b1_list, classes_list = [], [], []
    for name in head_names:
        classes, num_conv = heads[name]
        assert num_conv == 2, "fused kernel supports num_conv == 2 (ConvModule + final conv)"
        p = params[name]
        scale = p["bn_gamma"] / jnp.sqrt(p["bn_var"] + bn_eps)          # (hc,)
        w1_list.append(p["conv1_w"][:, :, 0] * scale[:, None])          # (hc, Cin)
        b1_list.append(p["bn_beta"] - p["bn_mean"] * scale)             # (hc,)
        classes_list.append(int(classes))

    n_heads = len(head_names)
    Hcat = head_conv * n_heads
    Ccat = int(sum(classes_list))
    Ccat_pad = _round_up(Ccat, 8)                                       # sublane-full output

    w1cat = jnp.concatenate(w1_list, axis=0)                            # (Hcat, Cin)
    b1cat = jnp.concatenate(b1_list, axis=0).reshape(Hcat, 1).astype(jnp.float32)

    w2bd = jnp.zeros((Ccat_pad, Hcat), jnp.float32)
    b2 = jnp.zeros((Ccat_pad, 1), jnp.float32)
    row = 0
    for i, name in enumerate(head_names):
        p = params[name]
        c = classes_list[i]
        w2bd = w2bd.at[row:row + c, i * head_conv:(i + 1) * head_conv].set(p["conv2_w"][:, :, 0])
        b2 = b2.at[row:row + c, 0].set(p["conv2_b"])
        row += c

    return {
        "w1": w1cat.astype(compute_dtype),   # bf16 streamed weights
        "b1": b1cat,                         # f32
        "w2": w2bd.astype(compute_dtype),    # bf16 streamed weights
        "b2": b2,                            # f32
    }


# --------------------------------------------------------------------------- #
# Forward path
# --------------------------------------------------------------------------- #
def _pick_lane_tile(L, max_tile=2048):
    """L is a multiple of 128.  Big lane tiles amortize the ~0.35 us/step grid
    overhead; if L splits into two >=512-lane halves keep >=2 parallel steps so
    both v7x TensorCores get work (no-op for the single-TC v5e/v6e)."""
    if L <= max_tile:
        half = L // 2
        if half >= 512 and half % 128 == 0:
            return half
        return L
    for tp in range(max_tile, 127, -128):
        if L % tp == 0:
            return tp
    return L


def ffn_pallas_forward(x, fused, *, heads, head_conv, tile_p=None):
    """x: (B, in_channels, P); fused: output of fuse_ffn_params.
    Returns dict[head] -> (B, classes, P), matching FFN.forward in eval mode."""
    B, Cin, P = x.shape
    classes_list = [int(heads[n][0]) for n in heads]
    Ccat = int(sum(classes_list))
    Hcat = head_conv * len(heads)
    Ccat_pad = fused["w2"].shape[0]
    compute_dtype = fused["w1"].dtype

    # ---- fold batch onto the lane axis; pad lanes to a multiple of 128 ------
    xf = jnp.transpose(x, (1, 0, 2)).reshape(Cin, B * P).astype(compute_dtype)
    L = _round_up(B * P, 128)
    if L != B * P:
        xf = jnp.pad(xf, ((0, 0), (0, L - B * P)))

    tp = _pick_lane_tile(L) if tile_p is None else int(tile_p)
    assert tp == L or (tp % 128 == 0 and L % tp == 0), (
        "lane tile must equal the padded lane extent or be a multiple of 128 dividing it")
    grid = (L // tp,)

    # ---- explicit VMEM budget (v7x: 64 MiB physical / 32 MiB default scope) --
    cd_b = jnp.dtype(compute_dtype).itemsize
    out_b = jnp.dtype(x.dtype).itemsize
    vmem_est = (2 * Cin * tp * cd_b                     # double-buffered x block
                + 2 * Ccat_pad * tp * out_b             # double-buffered out block
                + (Hcat * Cin + Ccat_pad * Hcat) * cd_b # resident weights
                + (Hcat + Ccat_pad) * 4                 # biases
                + Hcat * tp * 4)                        # f32 intermediate h
    vmem_limit = int(min(max(2 * vmem_est + (4 << 20), 16 << 20), 48 << 20))

    out_flat = pl.pallas_call(
        _ffn_fused_kernel,
        out_shape=jax.ShapeDtypeStruct((Ccat_pad, L), x.dtype),
        grid_spec=pltpu.PrefetchScalarGridSpec(
            num_scalar_prefetch=0,
            grid=grid,
            in_specs=[
                pl.BlockSpec((Cin, tp), lambda j: (0, j)),
                pl.BlockSpec((Hcat, Cin), lambda j: (0, 0)),
                pl.BlockSpec((Hcat, 1), lambda j: (0, 0)),
                pl.BlockSpec((Ccat_pad, Hcat), lambda j: (0, 0)),
                pl.BlockSpec((Ccat_pad, 1), lambda j: (0, 0)),
            ],
            out_specs=pl.BlockSpec((Ccat_pad, tp), lambda j: (0, j)),
        ),
        compiler_params=pltpu.CompilerParams(
            dimension_semantics=("parallel",),
            vmem_limit_bytes=vmem_limit),
    )(xf, fused["w1"], fused["b1"], fused["w2"], fused["b2"])

    # ---- drop padding, restore (B, Ccat, P), split per head -----------------
    y = out_flat[:Ccat, :B * P].reshape(Ccat, B, P).transpose(1, 0, 2)
    ret = {}
    row = 0
    for name, c in zip(heads, classes_list):
        ret[name] = y[:, row:row + c, :]
        row += c
    return ret


# --------------------------------------------------------------------------- #
# References (for testing only)
# --------------------------------------------------------------------------- #
def _reference_f32(x, params, heads, bn_eps=1e-5):
    """Pure-JAX f32 reference mirroring FFN.forward (Conv1d k=1 -> BN1d eval -> ReLU -> Conv1d)."""
    ret = {}
    for name, (classes, _) in heads.items():
        p = params[name]
        h = jnp.einsum("oc,bcp->bop", p["conv1_w"][:, :, 0], x)
        scale = p["bn_gamma"] / jnp.sqrt(p["bn_var"] + bn_eps)
        shift = p["bn_beta"] - p["bn_mean"] * scale
        h = jnp.maximum(h * scale[None, :, None] + shift[None, :, None], 0.0)
        ret[name] = jnp.einsum("oc,bcp->bop", p["conv2_w"][:, :, 0], h) \
            + p["conv2_b"][None, :, None]
    return ret


def _reference_quantized(x, params, heads, bn_eps=1e-5, compute_dtype=jnp.bfloat16):
    """Same math as the kernel: BN folded, x/weights quantized to bf16, f32 accumulate."""
    ret = {}
    xq = x.astype(compute_dtype).astype(jnp.float32)
    for name, (classes, _) in heads.items():
        p = params[name]
        scale = p["bn_gamma"] / jnp.sqrt(p["bn_var"] + bn_eps)
        w1 = (p["conv1_w"][:, :, 0] * scale[:, None]).astype(compute_dtype).astype(jnp.float32)
        b1 = p["bn_beta"] - p["bn_mean"] * scale
        h = jnp.maximum(jnp.einsum("oc,bcp->bop", w1, xq) + b1[None, :, None], 0.0)
        w2 = p["conv2_w"][:, :, 0].astype(compute_dtype).astype(jnp.float32)
        ret[name] = jnp.einsum("oc,bcp->bop", w2, h) + p["conv2_b"][None, :, None]
    return ret


def _kaiming(key, shape, fan_in):
    std = math.sqrt(2.0 / fan_in)
    return std * jax.random.normal(key, shape, jnp.float32)


if __name__ == "__main__":
    # Small shapes consistent with the module: x is (B, in_channels, num_proposals).
    B, Cin, P = 2, 32, 16
    head_conv = 32
    init_bias = -2.19
    heads = {
        "heatmap": (3, 2),
        "reg": (2, 2),
        "height": (1, 2),
        "dim": (3, 2),
        "rot": (2, 2),
        "vel": (2, 2),
    }

    root = jax.random.PRNGKey(0)
    k_x, k_params = jax.random.split(root)
    x = jax.random.normal(k_x, (B, Cin, P), jnp.float32)

    params = {}
    keys = jax.random.split(k_params, len(heads))
    for (name, (classes, _)), hk in zip(heads.items(), keys):
        k1, k2, k3, k4, k5, k6 = jax.random.split(hk, 6)
        params[name] = {
            # ConvModule: Conv1d(Cin -> head_conv, k=1, bias=False) + BN1d (eval) + ReLU
            "conv1_w": _kaiming(k1, (head_conv, Cin, 1), Cin),
            "bn_gamma": 0.5 + jax.random.uniform(k2, (head_conv,), jnp.float32),
            "bn_beta": 0.1 * jax.random.normal(k3, (head_conv,), jnp.float32),
            "bn_mean": 0.1 * jax.random.normal(k4, (head_conv,), jnp.float32),
            "bn_var": 0.5 + jax.random.uniform(k5, (head_conv,), jnp.float32),
            # final Conv1d(head_conv -> classes, k=1, bias=True)
            "conv2_w": _kaiming(k6, (classes, head_conv, 1), head_conv),
            "conv2_b": (jnp.full((classes,), init_bias, jnp.float32)
                        if name == "heatmap" else jnp.zeros((classes,), jnp.float32)),
        }

    # One-time weight fusion (model init), then a jitted forward.
    fused = fuse_ffn_params(params, heads, head_conv)
    forward = jax.jit(functools.partial(ffn_pallas_forward, heads=heads, head_conv=head_conv))

    out = forward(x, fused)
    jax.block_until_ready(out)

    ref_q = _reference_quantized(x, params, heads)   # same bf16 streaming as the kernel
    ref_f = _reference_f32(x, params, heads)         # exact module semantics in f32
    for name, (classes, _) in heads.items():
        assert out[name].shape == (B, classes, P), (name, out[name].shape)
        assert jnp.allclose(out[name], ref_q[name], atol=2e-3, rtol=2e-3), name
        assert jnp.allclose(out[name], ref_f[name], atol=5e-2, rtol=5e-2), name

    print("KERNEL_OK")
</pallas_src>

<mosaic_0001>
module attributes {stable_mosaic.version = 11 : i64} {
  func.func @_ffn_fused_kernel(%arg0: i32, %arg1: memref<32x128xbf16, #tpu.memory_space<vmem>>, %arg2: memref<192x32xbf16, #tpu.memory_space<vmem>>, %arg3: memref<192x1xf32, #tpu.memory_space<vmem>>, %arg4: memref<16x192xbf16, #tpu.memory_space<vmem>>, %arg5: memref<16x1xf32, #tpu.memory_space<vmem>>, %arg6: memref<16x128xf32, #tpu.memory_space<vmem>>) attributes {dimension_semantics = [#tpu.dimension_semantics<parallel>], iteration_bounds = array<i64: 1>, scalar_prefetch = 0 : i64, scratch_operands = 0 : i64, tpu.core_type = #tpu.core_type<tc>, window_params = [{transform_indices = @transform_0, window_bounds = array<i64: 32, 128>}, {pipeline_mode = #tpu.pipeline_mode<synchronous>, transform_indices = @transform_1, window_bounds = array<i64: 192, 32>}, {pipeline_mode = #tpu.pipeline_mode<synchronous>, transform_indices = @transform_2, window_bounds = array<i64: 192, 1>}, {pipeline_mode = #tpu.pipeline_mode<synchronous>, transform_indices = @transform_3, window_bounds = array<i64: 16, 192>}, {pipeline_mode = #tpu.pipeline_mode<synchronous>, transform_indices = @transform_4, window_bounds = array<i64: 16, 1>}, {transform_indices = @transform_5, window_bounds = array<i64: 16, 128>}]} {
    %c0 = arith.constant 0 : index
    %c0_0 = arith.constant 0 : index
    %0 = vector.load %arg2[%c0, %c0_0] : memref<192x32xbf16, #tpu.memory_space<vmem>>, vector<192x32xbf16>
    %c0_1 = arith.constant 0 : index
    %c0_2 = arith.constant 0 : index
    %1 = vector.load %arg1[%c0_1, %c0_2] : memref<32x128xbf16, #tpu.memory_space<vmem>>, vector<32x128xbf16>
    %cst = arith.constant dense<0.000000e+00> : vector<192x128xf32>
    %2 = tpu.matmul %0, %1, %cst {dimension_numbers = #tpu.dot_dimension_numbers<[1], [0], [0], [1], [0, 0, 1, 1], [], []>} : vector<192x32xbf16>, vector<32x128xbf16>, vector<192x128xf32> -> vector<192x128xf32>
    %c0_3 = arith.constant 0 : index
    %c0_4 = arith.constant 0 : index
    %3 = vector.load %arg3[%c0_3, %c0_4] : memref<192x1xf32, #tpu.memory_space<vmem>>, vector<192x1xf32>
    %4 = vector.broadcast %3 : vector<192x1xf32> to vector<192x128xf32>
    %5 = arith.addf %2, %4 : vector<192x128xf32>
    %cst_5 = arith.constant 0.000000e+00 : f32
    %6 = vector.broadcast %cst_5 : f32 to vector<192x128xf32>
    %7 = arith.maximumf %5, %6 : vector<192x128xf32>
    %c0_6 = arith.constant 0 : index
    %c0_7 = arith.constant 0 : index
    %8 = vector.load %arg4[%c0_6, %c0_7] : memref<16x192xbf16, #tpu.memory_space<vmem>>, vector<16x192xbf16>
    %9 = arith.extf %8 : vector<16x192xbf16> to vector<16x192xf32>
    %cst_8 = arith.constant dense<0.000000e+00> : vector<16x128xf32>
    %10 = tpu.matmul %9, %7, %cst_8 {dimension_numbers = #tpu.dot_dimension_numbers<[1], [0], [0], [1], [0, 0, 1, 1], [], []>} : vector<16x192xf32>, vector<192x128xf32>, vector<16x128xf32> -> vector<16x128xf32>
    %c0_9 = arith.constant 0 : index
    %c0_10 = arith.constant 0 : index
    %11 = vector.load %arg5[%c0_9, %c0_10] : memref<16x1xf32, #tpu.memory_space<vmem>>, vector<16x1xf32>
    %12 = vector.broadcast %11 : vector<16x1xf32> to vector<16x128xf32>
    %13 = arith.addf %10, %12 : vector<16x128xf32>
    %c0_11 = arith.constant 0 : index
    %c0_12 = arith.constant 0 : index
    %14 = vector.load %arg6[%c0_11, %c0_12] : memref<16x128xf32, #tpu.memory_space<vmem>>, vector<16x128xf32>
    tpu.vector_store %arg6[%c0_11, %c0_12], %13 {strides = array<i32>} : memref<16x128xf32, #tpu.memory_space<vmem>>, vector<16x128xf32>,
    return
  }
  func.func @transform_0(%arg0: i32) -> (i32, i32) {
    %c0_i32 = arith.constant 0 : i32
    %c0_i32_0 = arith.constant 0 : i32
    return %c0_i32, %arg0 : i32, i32
  }
  func.func @transform_1(%arg0: i32) -> (i32, i32) {
    %c0_i32 = arith.constant 0 : i32
    %c0_i32_0 = arith.constant 0 : i32
    %c0_i32_1 = arith.constant 0 : i32
    return %c0_i32, %c0_i32_0 : i32, i32
  }
  func.func @transform_2(%arg0: i32) -> (i32, i32) {
    %c0_i32 = arith.constant 0 : i32
    %c0_i32_0 = arith.constant 0 : i32
    %c0_i32_1 = arith.constant 0 : i32
    return %c0_i32, %c0_i32_0 : i32, i32
  }
  func.func @transform_3(%arg0: i32) -> (i32, i32) {
    %c0_i32 = arith.constant 0 : i32
    %c0_i32_0 = arith.constant 0 : i32
    %c0_i32_1 = arith.constant 0 : i32
    return %c0_i32, %c0_i32_0 : i32, i32
  }
  func.func @transform_4(%arg0: i32) -> (i32, i32) {
    %c0_i32 = arith.constant 0 : i32
    %c0_i32_0 = arith.constant 0 : i32
    %c0_i32_1 = arith.constant 0 : i32
    return %c0_i32, %c0_i32_0 : i32, i32
  }
  func.func @transform_5(%arg0: i32) -> (i32, i32) {
    %c0_i32 = arith.constant 0 : i32
    %c0_i32_0 = arith.constant 0 : i32
    return %c0_i32, %arg0 : i32, i32
  }
}

</mosaic_0001>

<bundles_post_ra>
// kernel: ffn_pallas_forward.1
= control target key start
LH: loop header
LB: loop body
LE: loop exit
PB: predicated region body
PF: predicated region fallthrough
CT: control target
= control target key end

     0   :  { %v685_v1 = vmov 0   ;;  %vm265_vm0 = vcmask 261120   ;;  %v686_v41 = vmov 0.0|0.0   ;;  %vm473_vm1 = vcmask 523264   ;;  %s879_s0 = inlined_call_operand.vmem [shape: bf16[32,128], index: 0, kind: input, shape index: {}]   ;;  %s880_s1 = inlined_call_operand.vmem [shape: bf16[192,32], index: 1, kind: input, shape index: {}]   ;;  %s881_s2 = inlined_call_operand.vmem [shape: f32[192,1], index: 2, kind: input, shape index: {}]   ;;  %s882_s4 = inlined_call_operand.vmem [shape: f32[16,1], index: 4, kind: input, shape index: {}]   ;;  %s883_s3 = inlined_call_operand.vmem [shape: bf16[16,192], index: 3, kind: input, shape index: {}]   ;;  %s884_s5 = inlined_call_operand.vmem [shape: f32[16,128], index: 5, kind: output, shape index: {}]  }
   0x1   :  { %v671_v0 = vld [vmem:[%s879_s0] sm:$0xff]   ;;  %669 = vset.pattern.permute.xlu0 %v685_v1  ;;  %670 = vset.pattern.permute.xlu1 %v685_v1  ;;  %v672_v2 = vld [vmem:[%s879_s0 + $0x8] sm:$0xff]   ;;  %v675_v5 = vld [vmem:[%s880_s1 + $0x10] sm:$0xff]  }
   0x2   :  { %603 = vmatprep.subr.bf16.mxu0 %v671_v0  ;;  %v673_v3 = vld [vmem:[%s880_s1] sm:$0xff]   ;;  %v674_v4 = vld [vmem:[%s880_s1 + $0x8] sm:$0xff]   ;;  %v51_v7 = vld [vmem:[%s881_s2 + $0x10] sm:$0xff]  ;;  %631 = vmatprep.subr.bf16.mxu1 %v686_v41 }
   0x3   :  { %604 = vmatpush3.bf16.msra.mxu0 %v671_v0  ;;  %607 = vmatprep.mubr.msk.bf16.mxu0 %vm265_vm0, %v673_v3  ;;  %v49_v6 = vld [vmem:[%s881_s2] sm:$0xff]  ;;  %v676_v8 = vld [vmem:[%s880_s1 + $0x18] sm:$0xff]   ;;  %v50_v9 = vld [vmem:[%s881_s2 + $0x8] sm:$0xff] }
   0x4   :  { %605 = vmatprep.subr.bf16.mxu0 %v672_v2  ;;  %75 = vperm.xlu0 %669, %v49_v6   ;;  %v677_v10 = vld [vmem:[%s880_s1 + $0x20] sm:$0xff]   ;;  %v52_v11 = vld [vmem:[%s881_s2 + $0x18] sm:$0xff]  ;;  %v54_v13 = vld [vmem:[%s881_s2 + $0x28] sm:$0xff] }
   0x5   :  { %85 = vperm.xlu1 %670, %v51_v7   ;;  %v53_v12 = vld [vmem:[%s881_s2 + $0x20] sm:$0xff]  ;;  %v678_v14 = vld [vmem:[%s880_s1 + $0x28] sm:$0xff]   ;;  %v55_v15 = vld [vmem:[%s881_s2 + $0x30] sm:$0xff] }
   0x6   :  { %v56_v16 = vld [vmem:[%s881_s2 + $0x38] sm:$0xff]  ;;  %v679_v17 = vld [vmem:[%s880_s1 + $0x30] sm:$0xff]   ;;  %v57_v18 = vld [vmem:[%s881_s2 + $0x40] sm:$0xff] }
   0x7   :  { %606 = vmatpush3.bf16.msra.mxu0 %v672_v2  ;;  %v58_v19 = vld [vmem:[%s881_s2 + $0x48] sm:$0xff]  ;;  %v680_v20 = vld [vmem:[%s880_s1 + $0x38] sm:$0xff]   ;;  %v59_v21 = vld [vmem:[%s881_s2 + $0x50] sm:$0xff] }
   0x8   :  { %80 = vperm.xlu0 %669, %v50_v9   ;;  %v60_v22 = vld [vmem:[%s881_s2 + $0x58] sm:$0xff]  ;;  %v681_v23 = vld [vmem:[%s880_s1 + $0x40] sm:$0xff]   ;;  %v62_v25 = vld [vmem:[%s881_s2 + $0x68] sm:$0xff] }
   0x9   :  { %90 = vperm.xlu1 %670, %v52_v11   ;;  %v61_v24 = vld [vmem:[%s881_s2 + $0x60] sm:$0xff]  ;;  %v682_v26 = vld [vmem:[%s880_s1 + $0x48] sm:$0xff]   ;;  %v63_v27 = vld [vmem:[%s881_s2 + $0x70] sm:$0xff] }
   0xa   :  { %608 = vmatmul.mubr.msk.bf16.vlgmr.msra.gmra.mrb[0].mxu0 %vm265_vm0, %v674_v4  ;;  %v64_v28 = vld [vmem:[%s881_s2 + $0x78] sm:$0xff]  ;;  %v683_v29 = vld [vmem:[%s880_s1 + $0x50] sm:$0xff]   ;;  %v65_v30 = vld [vmem:[%s881_s2 + $0x80] sm:$0xff] }
   0xb   :  { %611 = vmatprep.mubr.msk.bf16.mxu0 %vm265_vm0, %v675_v5  ;;  %v66_v31 = vld [vmem:[%s881_s2 + $0x88] sm:$0xff]  ;;  %v684_v32 = vld [vmem:[%s880_s1 + $0x58] sm:$0xff]   ;;  %v67_v33 = vld [vmem:[%s881_s2 + $0x90] sm:$0xff] }
   0xc   :  { %95 = vperm.xlu0 %669, %v53_v12   ;;  %v68_v34 = vld [vmem:[%s881_s2 + $0x98] sm:$0xff]  ;;  %v69_v35 = vld [vmem:[%s881_s2 + $0xa0] sm:$0xff]  ;;  %v70_v36 = vld [vmem:[%s881_s2 + $0xa8] sm:$0xff] }
   0xd   :  { %100 = vperm.xlu1 %670, %v54_v13   ;;  %v71_v37 = vld [vmem:[%s881_s2 + $0xb0] sm:$0xff]  ;;  %v72_v38 = vld [vmem:[%s881_s2 + $0xb8] sm:$0xff]  ;;  %v461_v39 = vld [vmem:[%s882_s4] sm:$0xff] }
   0xe   :  { %v462_v40 = vld [vmem:[%s882_s4 + $0x8] sm:$0xff]  ;;  %v853_v42 = vld [vmem:[%s883_s3] sm:$0xff] }
   0xf   :  { %v458_v43 = vunpack.c.h.bf16 %v853_v42 }
  0x10   :  { %105 = vperm.xlu0 %669, %v55_v15  }
  0x11   :  { %110 = vperm.xlu1 %670, %v56_v16   ;;  %587 = vmatprep.mubr.msk.f32.mxu1 %vm473_vm1, %v458_v43 }
  0x12   :  { %612 = vmatmul.mubr.msk.bf16.gmra.mrb[4].mxu0 %vm265_vm0, %v676_v8 }
  0x13   :  { %615 = vmatprep.mubr.msk.bf16.mxu0 %vm265_vm0, %v677_v10 }
  0x14   :  { %115 = vperm.xlu0 %669, %v57_v18  }
  0x15   :  { %120 = vperm.xlu1 %670, %v58_v19  }
  0x18   :  { %125 = vperm.xlu0 %669, %v59_v21  }
  0x19   :  { %130 = vperm.xlu1 %670, %v60_v22  }
  0x1a   :  { %616 = vmatmul.mubr.msk.bf16.gmra.mrb[8].mxu0 %vm265_vm0, %v678_v14 }
  0x1b   :  { %619 = vmatprep.mubr.msk.bf16.mxu0 %vm265_vm0, %v679_v17 }
  0x1c   :  { %135 = vperm.xlu0 %669, %v61_v24  }
  0x1d   :  { %140 = vperm.xlu1 %670, %v62_v25  }
  0x20   :  { %145 = vperm.xlu0 %669, %v63_v27  }
  0x21   :  { %150 = vperm.xlu1 %670, %v64_v28  }
  0x22   :  { %620 = vmatmul.mubr.msk.bf16.gmra.mrb[12].mxu0 %vm265_vm0, %v680_v20 }
  0x23   :  { %623 = vmatprep.mubr.msk.bf16.mxu0 %vm265_vm0, %v681_v23 }
  0x24   :  { %155 = vperm.xlu0 %669, %v65_v30  }
  0x25   :  { %160 = vperm.xlu1 %670, %v66_v31  }
  0x28   :  { %165 = vperm.xlu0 %669, %v67_v33  }
  0x29   :  { %170 = vperm.xlu1 %670, %v68_v34  }
  0x2a   :  { %624 = vmatmul.mubr.msk.bf16.gmra.mrb[16].mxu0 %vm265_vm0, %v682_v26 }
  0x2b   :  { %627 = vmatprep.mubr.msk.bf16.mxu0 %vm265_vm0, %v683_v29 }
  0x2c   :  { %175 = vperm.xlu0 %669, %v69_v35  }
  0x2d   :  { %180 = vperm.xlu1 %670, %v70_v36  }
  0x30   :  { %185 = vperm.xlu0 %669, %v71_v37  }
  0x31   :  { %190 = vperm.xlu1 %670, %v72_v38  }
  0x32   :  { %628 = vmatmul.mubr.msk.bf16.gmra.mrb[20].mxu0 %vm265_vm0, %v684_v32 }
  0x34   :  { %465 = vperm.xlu0 %669, %v461_v39  }
  0x35   :  { %470 = vperm.xlu1 %670, %v462_v40  }
  0x83   :  { %v76_v44 = vpop.permute.xlu0 %75 }
  0x84   :  { %v86_v45 = vpop.permute.xlu1 %85 }
  0x87   :  { %v81_v46 = vpop.permute.xlu0 %80 }
  0x88   :  { %v91_v47 = vpop.permute.xlu1 %90 }
  0x8b   :  { %v96_v48 = vpop.permute.xlu0 %95 }
  0x8c   :  { %v101_v49 = vpop.permute.xlu1 %100 }
  0x8f   :  { %v106_v50 = vpop.permute.xlu0 %105 }
  0x90   :  { %v111_v51 = vpop.permute.xlu1 %110 }
  0x93   :  { %v116_v52 = vpop.permute.xlu0 %115 }
  0x94   :  { %v121_v53 = vpop.permute.xlu1 %120 }
  0x97   :  { %v126_v61 = vpop.permute.xlu0 %125 }
  0x98   :  { %v131_v1 = vpop.permute.xlu1 %130 }
  0x9b   :  { %v136_v9 = vpop.permute.xlu0 %135 }
  0x9c   :  { %v141_v14 = vpop.permute.xlu1 %140 }
  0x9f   :  { %v146_v21 = vpop.permute.xlu0 %145 }
  0xa0   :  { %v151_v26 = vpop.permute.xlu1 %150 }
  0xa3   :  { %v156_v34 = vpop.permute.xlu0 %155 }
  0xa4   :  { %v161_v38 = vpop.permute.xlu1 %160 }
  0xdd   :  { %v609_v54 = vpop.f32.mrb[0].mxu0 }
  0xde   :  { %v345_v55 = vadd.f32 %v609_v54, %v86_v45  ;;  %v336_v56 = vpop.f32.mrb[1].mxu0 }
  0xdf   :  { %v337_v57 = vadd.f32 %v336_v56, %v76_v44  ;;  %v610_v58 = vpop.f32.mrb[2].mxu0 }
  0xe0   :  { %v348_v59 = vadd.f32 %v610_v58, %v91_v47  ;;  %v339_v60 = vpop.f32.mrb[3].mxu0  ;;  %v433_v63 = vmax.f32 %v345_v55, 0.0 }
  0xe1   :  { %v340_v62 = vadd.f32 %v339_v60, %v81_v46  ;;  %v431_v2 = vmax.f32 %v337_v57, 0.0 }
  0xe2   :  { %v434_v0 = vmax.f32 %v348_v59, 0.0 }
  0xe3   :  { %v432_v3 = vmax.f32 %v340_v62, 0.0 }
  0xe4   :  { %v635_v4 = vpack.c.bf16 %v434_v0, %v433_v63 }
  0xe5   :  { %v613_v5 = vpop.f32.mrb[4].mxu0  ;;  %v632_v6 = vpack.c.bf16 %v432_v3, %v431_v2 }
  0xe6   :  { %v361_v7 = vadd.f32 %v613_v5, %v106_v50  ;;  %v352_v8 = vpop.f32.mrb[5].mxu0 }
  0xe7   :  { %v353_v10 = vadd.f32 %v352_v8, %v96_v48  ;;  %v614_v11 = vpop.f32.mrb[6].mxu0  ;;  %633 = vmatpush1.bf16.msra.mxu1 %v632_v6 }
  0xe8   :  { %v364_v12 = vadd.f32 %v614_v11, %v111_v51  ;;  %v355_v13 = vpop.f32.mrb[7].mxu0  ;;  %634 = vmatprep.subr.bf16.mxu1 %v686_v41  ;;  %v437_v16 = vmax.f32 %v361_v7, 0.0 }
  0xe9   :  { %v356_v15 = vadd.f32 %v355_v13, %v101_v49  ;;  %v435_v18 = vmax.f32 %v353_v10, 0.0  ;;  %v166_v49 = vpop.permute.xlu0 %165 }
  0xea   :  { %v438_v17 = vmax.f32 %v364_v12, 0.0 }
  0xeb   :  { %v436_v19 = vmax.f32 %v356_v15, 0.0  ;;  %636 = vmatpush1.bf16.msra.mxu1 %v635_v4 }
  0xec   :  { %v641_v20 = vpack.c.bf16 %v438_v17, %v437_v16  ;;  %637 = vmatprep.subr.bf16.mxu1 %v686_v41 }
  0xed   :  { %v638_v22 = vpack.c.bf16 %v436_v19, %v435_v18  ;;  %v617_v23 = vpop.f32.mrb[8].mxu0 }
  0xee   :  { %v377_v24 = vadd.f32 %v617_v23, %v126_v61  ;;  %v368_v25 = vpop.f32.mrb[9].mxu0  ;;  %v176_v61 = vpop.permute.xlu0 %175 }
  0xef   :  { %v369_v27 = vadd.f32 %v368_v25, %v116_v52  ;;  %v618_v28 = vpop.f32.mrb[10].mxu0  ;;  %639 = vmatpush1.bf16.msra.mxu1 %v638_v22 }
  0xf0   :  { %v380_v29 = vadd.f32 %v618_v28, %v131_v1  ;;  %v371_v30 = vpop.f32.mrb[11].mxu0  ;;  %640 = vmatprep.subr.bf16.mxu1 %v686_v41  ;;  %v441_v32 = vmax.f32 %v377_v24, 0.0 }
  0xf1   :  { %v372_v31 = vadd.f32 %v371_v30, %v121_v53  ;;  %v439_v35 = vmax.f32 %v369_v27, 0.0  ;;  %v171_v53 = vpop.permute.xlu1 %170  ;;  %v457_v27 = vunpack.c.l.bf16 %v853_v42 }
  0xf2   :  { %v442_v33 = vmax.f32 %v380_v29, 0.0 }
  0xf3   :  { %v440_v36 = vmax.f32 %v372_v31, 0.0  ;;  %642 = vmatpush1.bf16.msra.mxu1 %v641_v20 }
  0xf4   :  { %v647_v37 = vpack.c.bf16 %v442_v33, %v441_v32  ;;  %643 = vmatprep.subr.bf16.mxu1 %v686_v41 }
  0xf5   :  { %v644_v39 = vpack.c.bf16 %v440_v36, %v439_v35  ;;  %v621_v40 = vpop.f32.mrb[12].mxu0  ;;  %v181_v2 = vpop.permute.xlu1 %180 }
  0xf6   :  { %v393_v43 = vadd.f32 %v621_v40, %v146_v21  ;;  %v384_v44 = vpop.f32.mrb[13].mxu0 }
  0xf7   :  { %v385_v45 = vadd.f32 %v384_v44, %v136_v9  ;;  %v622_v46 = vpop.f32.mrb[14].mxu0  ;;  %645 = vmatpush1.bf16.msra.mxu1 %v644_v39  ;;  %v186_v9 = vpop.permute.xlu0 %185 }
  0xf8   :  { %v396_v47 = vadd.f32 %v622_v46, %v151_v26  ;;  %v387_v48 = vpop.f32.mrb[15].mxu0  ;;  %646 = vmatprep.subr.bf16.mxu1 %v686_v41  ;;  %v445_v51 = vmax.f32 %v393_v43, 0.0  ;;  %v456_v26 = vld [vmem:[%s883_s3 + $0x8] sm:$0xff] }
  0xf9   :  { %v388_v50 = vadd.f32 %v387_v48, %v141_v14  ;;  %v443_v54 = vmax.f32 %v385_v45, 0.0  ;;  %v191_v14 = vpop.permute.xlu1 %190  ;;  %v460_v28 = vunpack.c.h.bf16 %v456_v26  ;;  %v459_v29 = vunpack.c.l.bf16 %v456_v26 }
  0xfa   :  { %v446_v52 = vmax.f32 %v396_v47, 0.0 }
  0xfb   :  { %v444_v55 = vmax.f32 %v388_v50, 0.0  ;;  %648 = vmatpush1.bf16.msra.mxu1 %v647_v37  ;;  %v466_v30 = vpop.permute.xlu0 %465 }
  0xfc   :  { %v653_v56 = vpack.c.bf16 %v446_v52, %v445_v51  ;;  %649 = vmatprep.subr.bf16.mxu1 %v686_v41 }
  0xfd   :  { %v650_v57 = vpack.c.bf16 %v444_v55, %v443_v54  ;;  %v625_v58 = vpop.f32.mrb[16].mxu0 }
  0xfe   :  { %v409_v59 = vadd.f32 %v625_v58, %v166_v49  ;;  %v400_v60 = vpop.f32.mrb[17].mxu0 }
  0xff   :  { %v401_v62 = vadd.f32 %v400_v60, %v156_v34  ;;  %v626_v63 = vpop.f32.mrb[18].mxu0  ;;  %651 = vmatpush1.bf16.msra.mxu1 %v650_v57 }
 0x100   :  { %v412_v0 = vadd.f32 %v626_v63, %v171_v53  ;;  %v403_v1 = vpop.f32.mrb[19].mxu0  ;;  %652 = vmatprep.subr.bf16.mxu1 %v686_v41  ;;  %v449_v4 = vmax.f32 %v409_v59, 0.0 }
 0x101   :  { %v404_v3 = vadd.f32 %v403_v1, %v161_v38  ;;  %v447_v6 = vmax.f32 %v401_v62, 0.0 }
 0x102   :  { %v450_v5 = vmax.f32 %v412_v0, 0.0 }
 0x103   :  { %v448_v7 = vmax.f32 %v404_v3, 0.0  ;;  %654 = vmatpush1.bf16.msra.mxu1 %v653_v56 }
 0x104   :  { %v659_v8 = vpack.c.bf16 %v450_v5, %v449_v4  ;;  %655 = vmatprep.subr.bf16.mxu1 %v686_v41 }
 0x105   :  { %v656_v10 = vpack.c.bf16 %v448_v7, %v447_v6  ;;  %v629_v11 = vpop.f32.mrb[20].mxu0 }
 0x106   :  { %v425_v12 = vadd.f32 %v629_v11, %v186_v9  ;;  %v416_v13 = vpop.f32.mrb[21].mxu0 }
 0x107   :  { %v417_v15 = vadd.f32 %v416_v13, %v176_v61  ;;  %v630_v16 = vpop.f32.mrb[22].mxu0  ;;  %657 = vmatpush1.bf16.msra.mxu1 %v656_v10 }
 0x108   :  { %v428_v17 = vadd.f32 %v630_v16, %v191_v14  ;;  %v419_v18 = vpop.f32.mrb[23].mxu0  ;;  %658 = vmatprep.subr.bf16.mxu1 %v686_v41  ;;  %v453_v20 = vmax.f32 %v425_v12, 0.0 }
 0x109   :  { %v420_v19 = vadd.f32 %v419_v18, %v181_v2  ;;  %v451_v22 = vmax.f32 %v417_v15, 0.0 }
 0x10a   :  { %v454_v21 = vmax.f32 %v428_v17, 0.0 }
 0x10b   :  { %v452_v23 = vmax.f32 %v420_v19, 0.0  ;;  %660 = vmatpush1.bf16.msra.mxu1 %v659_v8 }
 0x10c   :  { %v665_v24 = vpack.c.bf16 %v454_v21, %v453_v20  ;;  %661 = vmatprep.subr.bf16.mxu1 %v686_v41 }
 0x10d   :  { %v662_v25 = vpack.c.bf16 %v452_v23, %v451_v22 }
 0x10f   :  { %663 = vmatpush1.bf16.msra.mxu1 %v662_v25 }
 0x110   :  { %664 = vmatprep.subr.bf16.mxu1 %v686_v41  ;;  %v471_v41 = vpop.permute.xlu1 %470 }
 0x113   :  { %666 = vmatpush1.bf16.msra.mxu1 %v665_v24 }
 0x116   :  { %545 = vmatmul.mubr.f32.vlgmr.msra.gmra.mrb[0].mxu1 %v457_v27 }
 0x117   :  { %588 = vmatprep.mubr.msk.f32.mxu1 %vm473_vm1, %v460_v28 }
 0x11a   :  { %550 = vmatmul.mubr.f32.gmra.mrb[2].mxu1 %v459_v29 }
 0x1e9   :  { %v546_v31 = vpop.f32.mrb[0].mxu1 }
 0x1ea   :  { %v547_v32 = vadd.f32 %v546_v31, %v466_v30  ;;  %v548_v33 = vpop.f32.mrb[1].mxu1 }
 0x1ec   :  { %555 = vst [vmem:[%s884_s5] sm:$0xff] %v547_v32 }
 0x1ed   :  { %v551_v34 = vpop.f32.mrb[2].mxu1 }
 0x1ee   :  { %v552_v35 = vadd.f32 %v551_v34, %v471_v41  ;;  %v553_v36 = vpop.f32.mrb[3].mxu1 }
 0x1f0   :  { %556 = vst [vmem:[%s884_s5 + $0x8] sm:$0xff] %v552_v35 }

</bundles_post_ra>
